<compile_context>
chip_gen: v6e
topology: v6e:2x2x1
jax: 0.10.0
libtpu: 0.0.40
codegen_flags: <defaults>
</compile_context>

<pallas_src>
import functools

import numpy as np
import jax
import jax.numpy as jnp
from jax import lax
from jax.experimental import pallas as pl
from jax.experimental.pallas import tpu as pltpu


def _td_conv_kernel(x_ref, w_ref, b_ref, o_ref):
    # x_ref : (B, tb, Hp, K)   bf16  padded, channel-folded frames, tb time steps
    # w_ref : (tb, KH*K, N)    bf16  fused banded weights (row = dy*K + (w+dx)*C + c)
    # b_ref : (tb, 1, N)       f32   bias tiled along W
    # o_ref : (B, tb, H, N)          lane-dense output slab (N == W*Cout == 128)
    B, tb, H, N = o_ref.shape
    K = x_ref.shape[-1]
    KH = w_ref.shape[1] // K

    for t in range(tb):                       # static unroll over in-block time steps
        xt = x_ref[:, t]                      # (B, Hp, K): one VMEM load, sliced in vregs
        patch = jnp.concatenate(
            [xt[:, dy:dy + H, :] for dy in range(KH)], axis=-1
        ).reshape(B * H, KH * K)              # (B*H, KH*K): one K=216 MXU pass
        acc = jnp.dot(patch, w_ref[t], preferred_element_type=jnp.float32)
        acc = acc + b_ref[t]                  # (1, N) stays 2-D, broadcasts over rows
        o_ref[:, t] = acc.reshape(B, H, N).astype(o_ref.dtype)


def prepare_td_conv_params(weights, biases, W):
    """One-time host-side preprocessing of the (static) per-t conv parameters.

    weights: [T, KH, KW, C, Cout], biases: [T, Cout]  ->
      w_band : [T, KH*(W+KW-1)*C, W*Cout]  bf16 fused banded weight matrices
      b_tiled: [T, 1, W*Cout]              f32  bias tiled along W

    Hoisted out of the jitted call (conv weights are static at inference), so
    the band blow-up is paid once on the host, never per call inside XLA.
    """
    weights = np.asarray(weights, np.float32)
    biases = np.asarray(biases, np.float32)
    T, kh, kw, C, Cout = weights.shape
    K = (W + kw - 1) * C
    N = W * Cout

    # band[t, dy, (w+dx)*C + c, w*Cout + co] = weights[t, dy, dx, c, co]
    w_flat = weights.reshape(T, kh, kw * C, Cout)
    band = np.zeros((T, kh, K, N), np.float32)
    for w in range(W):  # disjoint column blocks -> no overwrites
        band[:, :, w * C:(w + kw) * C, w * Cout:(w + 1) * Cout] = w_flat
    band = band.reshape(T, kh * K, N)  # fused-KH band: row = dy*K + (w+dx)*C + c

    b_tiled = np.tile(biases, (1, W)).reshape(T, 1, N)
    return jnp.asarray(band, jnp.bfloat16), jnp.asarray(b_tiled, jnp.float32)


@functools.partial(jax.jit, static_argnames=("kh", "kw"))
def time_distributed_conv(x_nchw, w_band, b_tiled, *, kh=3, kw=3):
    """x: [B,T,C,H,W]; w_band / b_tiled from prepare_td_conv_params.

    Returns [B, T, Cout, H, W] (PyTorch layout), matching
    TimeDistributed(nn.Conv2d(C, Cout, 3, padding=1), T).forward(x).
    """
    B, T, C, H, W = x_nchw.shape
    N = b_tiled.shape[-1]            # W * Cout  (== 128 here -> lane dense)
    Cout = N // W
    ph, pw = kh // 2, kw // 2
    Hp = H + 2 * ph
    K = (W + 2 * pw) * C

    # --- glue: NCHW -> NHWC, spatial zero-pad, fold (W, C), cast to bf16 ---
    # TODO(synk): transpose/pad are one extra HBM pass over x; drop them if the
    # adjacent layers can produce/consume the NHWC / (B,T,H,W*Cout) slab layout.
    x_nhwc = jnp.transpose(x_nchw, (0, 1, 3, 4, 2))                    # [B,T,H,W,C]
    x_pad = jnp.pad(x_nhwc, ((0, 0), (0, 0), (ph, ph), (pw, pw), (0, 0)))
    x_folded = x_pad.reshape(B, T, Hp, K).astype(jnp.bfloat16)         # [B,T,Hp,K]

    # t-blocking: keep >= 2 parallel grid steps so v7x's 2 TCs both get work.
    tb = T // 2 if T % 2 == 0 else 1
    grid = (T // tb,)

    out_slab = pl.pallas_call(
        _td_conv_kernel,
        out_shape=jax.ShapeDtypeStruct((B, T, H, N), x_nchw.dtype),
        grid_spec=pltpu.PrefetchScalarGridSpec(
            num_scalar_prefetch=0,
            grid=grid,
            in_specs=[
                # all batch frames for tb consecutive time steps (padded, folded)
                pl.BlockSpec((B, tb, Hp, K), lambda g: (0, g, 0, 0)),
                # fused banded weights of those tb conv layers
                pl.BlockSpec((tb, kh * K, N), lambda g: (g, 0, 0)),
                # tiled biases of those tb conv layers
                pl.BlockSpec((tb, 1, N), lambda g: (g, 0, 0)),
            ],
            out_specs=pl.BlockSpec((B, tb, H, N), lambda g: (0, g, 0, 0)),
        ),
        compiler_params=pltpu.CompilerParams(
            dimension_semantics=("parallel",),
        ),
    )(x_folded, w_band, b_tiled)

    # --- glue back to PyTorch layout [B, T, Cout, H, W] ---
    return jnp.transpose(out_slab.reshape(B, T, H, W, Cout), (0, 1, 4, 2, 3))


def _reference(x_nchw, weights, biases):
    """Pure-JAX reference: per-time-step conv via lax.conv_general_dilated."""
    B, T, C, H, W = x_nchw.shape
    outs = []
    for t in range(T):
        # weights[t]: (KH, KW, C, Cout) -> OIHW
        w_oihw = jnp.transpose(weights[t], (3, 2, 0, 1))
        y = lax.conv_general_dilated(
            x_nchw[:, t], w_oihw, window_strides=(1, 1), padding="SAME",
            dimension_numbers=("NCHW", "OIHW", "NCHW"),
        )
        y = y + biases[t][None, :, None, None]
        outs.append(y[:, None])
    return jnp.concatenate(outs, axis=1)


if __name__ == "__main__":
    B, T, C, H, W, Cout = 2, 8, 4, 16, 16, 8
    KH = KW = 3

    key = jax.random.PRNGKey(0)
    kx, kw_, kb = jax.random.split(key, 3)

    x = jax.random.normal(kx, (B, T, C, H, W), dtype=jnp.float32)
    # One independent Conv2d per time step (the TimeDistributed semantics).
    weights = 0.1 * jax.random.normal(kw_, (T, KH, KW, C, Cout), dtype=jnp.float32)
    biases = 0.1 * jax.random.normal(kb, (T, Cout), dtype=jnp.float32)

    # One-time (cached) host-side packing of the static conv parameters.
    w_band, b_tiled = prepare_td_conv_params(weights, biases, W)

    out = time_distributed_conv(x, w_band, b_tiled)
    out = jax.block_until_ready(out)

    ref = jax.block_until_ready(_reference(x, weights, biases))

    assert out.shape == (B, T, Cout, H, W), out.shape
    max_err = float(jnp.max(jnp.abs(out - ref)))
    assert jnp.allclose(out, ref, rtol=1e-2, atol=1e-2), max_err
    print("KERNEL_OK")
</pallas_src>

<mosaic_0001>
module attributes {stable_mosaic.version = 11 : i64} {
  func.func @_td_conv_kernel(%arg0: i32, %arg1: memref<2x4x18x72xbf16, #tpu.memory_space<vmem>>, %arg2: memref<4x216x128xbf16, #tpu.memory_space<vmem>>, %arg3: memref<4x1x128xf32, #tpu.memory_space<vmem>>, %arg4: memref<2x4x16x128xf32, #tpu.memory_space<vmem>>) attributes {dimension_semantics = [#tpu.dimension_semantics<parallel>], iteration_bounds = array<i64: 2>, scalar_prefetch = 0 : i64, scratch_operands = 0 : i64, tpu.core_type = #tpu.core_type<tc>, window_params = [{transform_indices = @transform_0, window_bounds = array<i64: 2, 4, 18, 72>}, {transform_indices = @transform_1, window_bounds = array<i64: 4, 216, 128>}, {transform_indices = @transform_2, window_bounds = array<i64: 4, 1, 128>}, {transform_indices = @transform_3, window_bounds = array<i64: 2, 4, 16, 128>}]} {
    %c0 = arith.constant 0 : index
    %c0_0 = arith.constant 0 : index
    %c0_1 = arith.constant 0 : index
    %c0_2 = arith.constant 0 : index
    %0 = vector.load %arg1[%c0, %c0_0, %c0_1, %c0_2] : memref<2x4x18x72xbf16, #tpu.memory_space<vmem>>, vector<2x1x18x72xbf16>
    %1 = vector.shape_cast %0 : vector<2x1x18x72xbf16> to vector<2x18x72xbf16>
    %2 = vector.extract_strided_slice %1 {offsets = [0, 0, 0], sizes = [2, 16, 72], strides = [1, 1, 1]} : vector<2x18x72xbf16> to vector<2x16x72xbf16>
    %3 = vector.extract_strided_slice %1 {offsets = [0, 1, 0], sizes = [2, 16, 72], strides = [1, 1, 1]} : vector<2x18x72xbf16> to vector<2x16x72xbf16>
    %4 = vector.extract_strided_slice %1 {offsets = [0, 2, 0], sizes = [2, 16, 72], strides = [1, 1, 1]} : vector<2x18x72xbf16> to vector<2x16x72xbf16>
    %5 = tpu.concatenate %2, %3, %4 in 2 : vector<2x16x72xbf16>, vector<2x16x72xbf16>, vector<2x16x72xbf16> -> vector<2x16x216xbf16>
    %6 = vector.shape_cast %5 : vector<2x16x216xbf16> to vector<32x216xbf16>
    %c0_3 = arith.constant 0 : index
    %c0_4 = arith.constant 0 : index
    %c0_5 = arith.constant 0 : index
    %7 = vector.load %arg2[%c0_3, %c0_4, %c0_5] : memref<4x216x128xbf16, #tpu.memory_space<vmem>>, vector<1x216x128xbf16>
    %8 = vector.shape_cast %7 : vector<1x216x128xbf16> to vector<216x128xbf16>
    %cst = arith.constant dense<0.000000e+00> : vector<32x128xf32>
    %9 = tpu.matmul %6, %8, %cst {dimension_numbers = #tpu.dot_dimension_numbers<[1], [0], [0], [1], [0, 0, 1, 1], [], []>} : vector<32x216xbf16>, vector<216x128xbf16>, vector<32x128xf32> -> vector<32x128xf32>
    %c0_6 = arith.constant 0 : index
    %c0_7 = arith.constant 0 : index
    %c0_8 = arith.constant 0 : index
    %10 = vector.load %arg3[%c0_6, %c0_7, %c0_8] : memref<4x1x128xf32, #tpu.memory_space<vmem>>, vector<1x1x128xf32>
    %11 = vector.shape_cast %10 : vector<1x1x128xf32> to vector<1x128xf32>
    %12 = vector.broadcast %11 : vector<1x128xf32> to vector<32x128xf32>
    %13 = arith.addf %9, %12 : vector<32x128xf32>
    %14 = vector.shape_cast %13 : vector<32x128xf32> to vector<2x16x128xf32>
    %c0_9 = arith.constant 0 : index
    %c0_10 = arith.constant 0 : index
    %c0_11 = arith.constant 0 : index
    %c0_12 = arith.constant 0 : index
    %15 = vector.load %arg4[%c0_9, %c0_10, %c0_11, %c0_12] : memref<2x4x16x128xf32, #tpu.memory_space<vmem>>, vector<2x1x16x128xf32>
    %16 = vector.shape_cast %15 : vector<2x1x16x128xf32> to vector<2x16x128xf32>
    %17 = vector.shape_cast %14 : vector<2x16x128xf32> to vector<2x1x16x128xf32>
    tpu.vector_store %arg4[%c0_9, %c0_10, %c0_11, %c0_12], %17 {strides = array<i32>} : memref<2x4x16x128xf32, #tpu.memory_space<vmem>>, vector<2x1x16x128xf32>,
    %c0_13 = arith.constant 0 : index
    %c1 = arith.constant 1 : index
    %c0_14 = arith.constant 0 : index
    %c0_15 = arith.constant 0 : index
    %18 = vector.load %arg1[%c0_13, %c1, %c0_14, %c0_15] : memref<2x4x18x72xbf16, #tpu.memory_space<vmem>>, vector<2x1x18x72xbf16>
    %19 = vector.shape_cast %18 : vector<2x1x18x72xbf16> to vector<2x18x72xbf16>
    %20 = vector.extract_strided_slice %19 {offsets = [0, 0, 0], sizes = [2, 16, 72], strides = [1, 1, 1]} : vector<2x18x72xbf16> to vector<2x16x72xbf16>
    %21 = vector.extract_strided_slice %19 {offsets = [0, 1, 0], sizes = [2, 16, 72], strides = [1, 1, 1]} : vector<2x18x72xbf16> to vector<2x16x72xbf16>
    %22 = vector.extract_strided_slice %19 {offsets = [0, 2, 0], sizes = [2, 16, 72], strides = [1, 1, 1]} : vector<2x18x72xbf16> to vector<2x16x72xbf16>
    %23 = tpu.concatenate %20, %21, %22 in 2 : vector<2x16x72xbf16>, vector<2x16x72xbf16>, vector<2x16x72xbf16> -> vector<2x16x216xbf16>
    %24 = vector.shape_cast %23 : vector<2x16x216xbf16> to vector<32x216xbf16>
    %c1_16 = arith.constant 1 : index
    %c0_17 = arith.constant 0 : index
    %c0_18 = arith.constant 0 : index
    %25 = vector.load %arg2[%c1_16, %c0_17, %c0_18] : memref<4x216x128xbf16, #tpu.memory_space<vmem>>, vector<1x216x128xbf16>
    %26 = vector.shape_cast %25 : vector<1x216x128xbf16> to vector<216x128xbf16>
    %cst_19 = arith.constant dense<0.000000e+00> : vector<32x128xf32>
    %27 = tpu.matmul %24, %26, %cst_19 {dimension_numbers = #tpu.dot_dimension_numbers<[1], [0], [0], [1], [0, 0, 1, 1], [], []>} : vector<32x216xbf16>, vector<216x128xbf16>, vector<32x128xf32> -> vector<32x128xf32>
    %c1_20 = arith.constant 1 : index
    %c0_21 = arith.constant 0 : index
    %c0_22 = arith.constant 0 : index
    %28 = vector.load %arg3[%c1_20, %c0_21, %c0_22] : memref<4x1x128xf32, #tpu.memory_space<vmem>>, vector<1x1x128xf32>
    %29 = vector.shape_cast %28 : vector<1x1x128xf32> to vector<1x128xf32>
    %30 = vector.broadcast %29 : vector<1x128xf32> to vector<32x128xf32>
    %31 = arith.addf %27, %30 : vector<32x128xf32>
    %32 = vector.shape_cast %31 : vector<32x128xf32> to vector<2x16x128xf32>
    %c0_23 = arith.constant 0 : index
    %c1_24 = arith.constant 1 : index
    %c0_25 = arith.constant 0 : index
    %c0_26 = arith.constant 0 : index
    %33 = vector.load %arg4[%c0_23, %c1_24, %c0_25, %c0_26] : memref<2x4x16x128xf32, #tpu.memory_space<vmem>>, vector<2x1x16x128xf32>
    %34 = vector.shape_cast %33 : vector<2x1x16x128xf32> to vector<2x16x128xf32>
    %35 = vector.shape_cast %32 : vector<2x16x128xf32> to vector<2x1x16x128xf32>
    tpu.vector_store %arg4[%c0_23, %c1_24, %c0_25, %c0_26], %35 {strides = array<i32>} : memref<2x4x16x128xf32, #tpu.memory_space<vmem>>, vector<2x1x16x128xf32>,
    %c0_27 = arith.constant 0 : index
    %c2 = arith.constant 2 : index
    %c0_28 = arith.constant 0 : index
    %c0_29 = arith.constant 0 : index
    %36 = vector.load %arg1[%c0_27, %c2, %c0_28, %c0_29] : memref<2x4x18x72xbf16, #tpu.memory_space<vmem>>, vector<2x1x18x72xbf16>
    %37 = vector.shape_cast %36 : vector<2x1x18x72xbf16> to vector<2x18x72xbf16>
    %38 = vector.extract_strided_slice %37 {offsets = [0, 0, 0], sizes = [2, 16, 72], strides = [1, 1, 1]} : vector<2x18x72xbf16> to vector<2x16x72xbf16>
    %39 = vector.extract_strided_slice %37 {offsets = [0, 1, 0], sizes = [2, 16, 72], strides = [1, 1, 1]} : vector<2x18x72xbf16> to vector<2x16x72xbf16>
    %40 = vector.extract_strided_slice %37 {offsets = [0, 2, 0], sizes = [2, 16, 72], strides = [1, 1, 1]} : vector<2x18x72xbf16> to vector<2x16x72xbf16>
    %41 = tpu.concatenate %38, %39, %40 in 2 : vector<2x16x72xbf16>, vector<2x16x72xbf16>, vector<2x16x72xbf16> -> vector<2x16x216xbf16>
    %42 = vector.shape_cast %41 : vector<2x16x216xbf16> to vector<32x216xbf16>
    %c2_30 = arith.constant 2 : index
    %c0_31 = arith.constant 0 : index
    %c0_32 = arith.constant 0 : index
    %43 = vector.load %arg2[%c2_30, %c0_31, %c0_32] : memref<4x216x128xbf16, #tpu.memory_space<vmem>>, vector<1x216x128xbf16>
    %44 = vector.shape_cast %43 : vector<1x216x128xbf16> to vector<216x128xbf16>
    %cst_33 = arith.constant dense<0.000000e+00> : vector<32x128xf32>
    %45 = tpu.matmul %42, %44, %cst_33 {dimension_numbers = #tpu.dot_dimension_numbers<[1], [0], [0], [1], [0, 0, 1, 1], [], []>} : vector<32x216xbf16>, vector<216x128xbf16>, vector<32x128xf32> -> vector<32x128xf32>
    %c2_34 = arith.constant 2 : index
    %c0_35 = arith.constant 0 : index
    %c0_36 = arith.constant 0 : index
    %46 = vector.load %arg3[%c2_34, %c0_35, %c0_36] : memref<4x1x128xf32, #tpu.memory_space<vmem>>, vector<1x1x128xf32>
    %47 = vector.shape_cast %46 : vector<1x1x128xf32> to vector<1x128xf32>
    %48 = vector.broadcast %47 : vector<1x128xf32> to vector<32x128xf32>
    %49 = arith.addf %45, %48 : vector<32x128xf32>
    %50 = vector.shape_cast %49 : vector<32x128xf32> to vector<2x16x128xf32>
    %c0_37 = arith.constant 0 : index
    %c2_38 = arith.constant 2 : index
    %c0_39 = arith.constant 0 : index
    %c0_40 = arith.constant 0 : index
    %51 = vector.load %arg4[%c0_37, %c2_38, %c0_39, %c0_40] : memref<2x4x16x128xf32, #tpu.memory_space<vmem>>, vector<2x1x16x128xf32>
    %52 = vector.shape_cast %51 : vector<2x1x16x128xf32> to vector<2x16x128xf32>
    %53 = vector.shape_cast %50 : vector<2x16x128xf32> to vector<2x1x16x128xf32>
    tpu.vector_store %arg4[%c0_37, %c2_38, %c0_39, %c0_40], %53 {strides = array<i32>} : memref<2x4x16x128xf32, #tpu.memory_space<vmem>>, vector<2x1x16x128xf32>,
    %c0_41 = arith.constant 0 : index
    %c3 = arith.constant 3 : index
    %c0_42 = arith.constant 0 : index
    %c0_43 = arith.constant 0 : index
    %54 = vector.load %arg1[%c0_41, %c3, %c0_42, %c0_43] : memref<2x4x18x72xbf16, #tpu.memory_space<vmem>>, vector<2x1x18x72xbf16>
    %55 = vector.shape_cast %54 : vector<2x1x18x72xbf16> to vector<2x18x72xbf16>
    %56 = vector.extract_strided_slice %55 {offsets = [0, 0, 0], sizes = [2, 16, 72], strides = [1, 1, 1]} : vector<2x18x72xbf16> to vector<2x16x72xbf16>
    %57 = vector.extract_strided_slice %55 {offsets = [0, 1, 0], sizes = [2, 16, 72], strides = [1, 1, 1]} : vector<2x18x72xbf16> to vector<2x16x72xbf16>
    %58 = vector.extract_strided_slice %55 {offsets = [0, 2, 0], sizes = [2, 16, 72], strides = [1, 1, 1]} : vector<2x18x72xbf16> to vector<2x16x72xbf16>
    %59 = tpu.concatenate %56, %57, %58 in 2 : vector<2x16x72xbf16>, vector<2x16x72xbf16>, vector<2x16x72xbf16> -> vector<2x16x216xbf16>
    %60 = vector.shape_cast %59 : vector<2x16x216xbf16> to vector<32x216xbf16>
    %c3_44 = arith.constant 3 : index
    %c0_45 = arith.constant 0 : index
    %c0_46 = arith.constant 0 : index
    %61 = vector.load %arg2[%c3_44, %c0_45, %c0_46] : memref<4x216x128xbf16, #tpu.memory_space<vmem>>, vector<1x216x128xbf16>
    %62 = vector.shape_cast %61 : vector<1x216x128xbf16> to vector<216x128xbf16>
    %cst_47 = arith.constant dense<0.000000e+00> : vector<32x128xf32>
    %63 = tpu.matmul %60, %62, %cst_47 {dimension_numbers = #tpu.dot_dimension_numbers<[1], [0], [0], [1], [0, 0, 1, 1], [], []>} : vector<32x216xbf16>, vector<216x128xbf16>, vector<32x128xf32> -> vector<32x128xf32>
    %c3_48 = arith.constant 3 : index
    %c0_49 = arith.constant 0 : index
    %c0_50 = arith.constant 0 : index
    %64 = vector.load %arg3[%c3_48, %c0_49, %c0_50] : memref<4x1x128xf32, #tpu.memory_space<vmem>>, vector<1x1x128xf32>
    %65 = vector.shape_cast %64 : vector<1x1x128xf32> to vector<1x128xf32>
    %66 = vector.broadcast %65 : vector<1x128xf32> to vector<32x128xf32>
    %67 = arith.addf %63, %66 : vector<32x128xf32>
    %68 = vector.shape_cast %67 : vector<32x128xf32> to vector<2x16x128xf32>
    %c0_51 = arith.constant 0 : index
    %c3_52 = arith.constant 3 : index
    %c0_53 = arith.constant 0 : index
    %c0_54 = arith.constant 0 : index
    %69 = vector.load %arg4[%c0_51, %c3_52, %c0_53, %c0_54] : memref<2x4x16x128xf32, #tpu.memory_space<vmem>>, vector<2x1x16x128xf32>
    %70 = vector.shape_cast %69 : vector<2x1x16x128xf32> to vector<2x16x128xf32>
    %71 = vector.shape_cast %68 : vector<2x16x128xf32> to vector<2x1x16x128xf32>
    tpu.vector_store %arg4[%c0_51, %c3_52, %c0_53, %c0_54], %71 {strides = array<i32>} : memref<2x4x16x128xf32, #tpu.memory_space<vmem>>, vector<2x1x16x128xf32>,
    return
  }
  func.func @transform_0(%arg0: i32) -> (i32, i32, i32, i32) {
    %c0_i32 = arith.constant 0 : i32
    %c0_i32_0 = arith.constant 0 : i32
    %c0_i32_1 = arith.constant 0 : i32
    %c0_i32_2 = arith.constant 0 : i32
    return %c0_i32, %arg0, %c0_i32_0, %c0_i32_1 : i32, i32, i32, i32
  }
  func.func @transform_1(%arg0: i32) -> (i32, i32, i32) {
    %c0_i32 = arith.constant 0 : i32
    %c0_i32_0 = arith.constant 0 : i32
    %c0_i32_1 = arith.constant 0 : i32
    return %arg0, %c0_i32, %c0_i32_0 : i32, i32, i32
  }
  func.func @transform_2(%arg0: i32) -> (i32, i32, i32) {
    %c0_i32 = arith.constant 0 : i32
    %c0_i32_0 = arith.constant 0 : i32
    %c0_i32_1 = arith.constant 0 : i32
    return %arg0, %c0_i32, %c0_i32_0 : i32, i32, i32
  }
  func.func @transform_3(%arg0: i32) -> (i32, i32, i32, i32) {
    %c0_i32 = arith.constant 0 : i32
    %c0_i32_0 = arith.constant 0 : i32
    %c0_i32_1 = arith.constant 0 : i32
    %c0_i32_2 = arith.constant 0 : i32
    return %c0_i32, %arg0, %c0_i32_0, %c0_i32_1 : i32, i32, i32, i32
  }
}

</mosaic_0001>

<bundles_post_ra>
// kernel: time_distributed_conv.1
= control target key start
LH: loop header
LB: loop body
LE: loop exit
PB: predicated region body
PF: predicated region fallthrough
CT: control target
= control target key end

     0   :  { %s1896_s12 = smov 0   ;;  %s1898_s13 = smov 0   ;;  %s2271_s0 = inlined_call_operand.vmem [shape: bf16[2,8,18,72], index: 0, kind: input, shape index: {}]   ;;  %s2272_s1 = inlined_call_operand.vmem [shape: bf16[8,216,128], index: 1, kind: input, shape index: {}]   ;;  %s2273_s2 = inlined_call_operand.vmem [shape: f32[8,1,128], index: 2, kind: input, shape index: {}]   ;;  %s2274_s3 = inlined_call_operand.vmem [shape: f32[2,8,16,128], index: 3, kind: output, shape index: {}]  }
   0x1   :  { %s1900_s14 = smov 0  }
   0x2 LB: > { %s1912_s15 = sadd.s32 4294967295, %s1871_s14   ;;  %s1915_s16 = sadd.s32 1, %s1871_s14   ;;  %s1871_s14 = sphi %s1900_s14, %s2279_s14   ;;  %s1867_s13 = sphi %s1898_s13, %s2278_s13   ;;  %s1863_s12 = sphi %s1896_s12, %s2277_s12  }
   0x3   : > { %s17_s17 = ssub.s32 %s1871_s14, %s1915_s16  ;;  %s20_s18 = sadd.s32 1, %s1867_s13 }
   0x4   : > { %p18_p0 = scmp.eq.s32.totalorder %s17_s17, 0  ;;  %p27_p1 = scmp.ne.s32.totalorder %s1867_s13, %s1863_s12 }
   0x5   : > { %p28_p2 = scmp.eq.s32.totalorder %s1871_s14, 0  ;;  %p109_p3 = scmp.eq.s32.totalorder %s1912_s15, 1 }
   0x6   : > { %s1925_s19 = scalar_select %p18_p0, %s1867_s13, %s20_s18  }
   0x7   : > { %p29_p4 = por %p28_p2, %p27_p1  ;;  %p1927_p5 = por %p109_p3, %p27_p1 }
   0x8   : > { %p1531_p6 = scmp.ge.s32.totalorder %s1871_s14, 2 }
   0xa   : > { %131 = sbr.rel (%p1531_p6) target bundleno = 26 (0x1a), region = 16 }
   0xf   : > { %134 = sbr.rel (!%p29_p4) target bundleno = 26 (0x1a), region = 20  ;;  %s136_s21 = sand.u32 (%p29_p4), 1, %s1867_s13  }
  0x10   : > { %s1747_s22 = smul.u32 (%p29_p4), 48, %s1871_s14 }
  0x11   : > { %s1746_s23 = smul.u32 (%p29_p4), 96, %s136_s21 }
  0x12   : > { %s142_s26 = scalar_lea.vmem (%p29_p4), %s2271_s0, %s1747_s22 }
  0x13   : > { %v159_v0 = vld [vmem:[%s142_s26] sm:$0xff] (%p29_p4)   ;;  %v163_v1 = vld [vmem:[%s142_s26 + $0x8] sm:$0xff] (%p29_p4)   ;;  %v167_v2 = vld [vmem:[%s142_s26 + $0x10] sm:$0xff] (%p29_p4)   ;;  %s138_s27 = scalar_lea.vmem (%p29_p4), [#allocation2], %s1746_s23 }
  0x14   : > { %160 = vst [vmem:[%s138_s27] sm:$0xff] %v159_v0   ;;  %164 = vst [vmem:[%s138_s27 + $0x8] sm:$0xff] %v163_v1   ;;  %v171_v3 = vld [vmem:[%s142_s26 + $0x18] sm:$0xff]   ;;  %v175_v4 = vld [vmem:[%s142_s26 + $0x20] sm:$0xff]  }
  0x15   : > { %168 = vst [vmem:[%s138_s27 + $0x10] sm:$0xff] %v167_v2   ;;  %v179_v5 = vld [vmem:[%s142_s26 + $0x28] sm:$0xff]   ;;  %172 = vst [vmem:[%s138_s27 + $0x18] sm:$0xff] %v171_v3   ;;  %v183_v6 = vld [vmem:[%s142_s26 + $0x60] sm:$0xff]  }
  0x16   : > { %176 = vst [vmem:[%s138_s27 + $0x20] sm:$0xff] %v175_v4   ;;  %180 = vst [vmem:[%s138_s27 + $0x28] sm:$0xff] %v179_v5   ;;  %v187_v7 = vld [vmem:[%s142_s26 + $0x68] sm:$0xff]   ;;  %v191_v8 = vld [vmem:[%s142_s26 + $0x70] sm:$0xff]  }
  0x17   : > { %184 = vst [vmem:[%s138_s27 + $0x30] sm:$0xff] %v183_v6   ;;  %188 = vst [vmem:[%s138_s27 + $0x38] sm:$0xff] %v187_v7   ;;  %v195_v9 = vld [vmem:[%s142_s26 + $0x78] sm:$0xff]   ;;  %v199_v10 = vld [vmem:[%s142_s26 + $0x80] sm:$0xff]  }
  0x18   : > { %192 = vst [vmem:[%s138_s27 + $0x40] sm:$0xff] %v191_v8   ;;  %v203_v11 = vld [vmem:[%s142_s26 + $0x88] sm:$0xff]   ;;  %196 = vst [vmem:[%s138_s27 + $0x48] sm:$0xff] %v195_v9  }
  0x19   : > { %200 = vst [vmem:[%s138_s27 + $0x50] sm:$0xff] %v199_v10   ;;  %204 = vst [vmem:[%s138_s27 + $0x58] sm:$0xff] %v203_v11  }
  0x1a PF: > { %p1535_p7 = scmp.ge.s32.totalorder %s1871_s14, 1  ;;  %p295_p8 = scmp.lt.s32.totalorder %s1871_s14, 3 }
  0x1c   : > { %p296_p9 = pnand %p1535_p7, %p295_p8 }
  0x1d   : > { %s302_s28 = sand.u32 (!%p296_p9), 1, %s1863_s12   ;;  %s1537_s30 = sshll.u32 (!%p296_p9), %s1912_s15, 2 }
  0x1e   : > { %299 = sbr.rel (%p296_p9) target bundleno = 437 (0x1b5), region = 69  ;;  %p1961_p10 = scmp.lt.s32.totalorder (!%p296_p9), %s1537_s30, 7 }
  0x1f   : > { %s1748_s29 = smul.u32 (!%p296_p9), 96, %s302_s28  ;;  %s1874_s6 = smov (!%p296_p9), 72  }
  0x20   : > { %s1875_s7 = smov (!%p296_p9), 16   ;;  %s1536_s21 = sshll.u32 (!%p296_p9), %s302_s28, 7 }
  0x21   : > { %s1945_s4 = scalar_lea.vmem (!%p296_p9), [#allocation2], %s1748_s29  ;;  %s2219_s22 = scalar_lea.vmem (!%p296_p9), [#allocation3], %s1536_s21 }
  0x23   : > { %v1873_v12 = vmov 0   ;;  %vm371_vm0 = vsmask.f32 7424  ;;  %v1948_v13 = vld [vmem:[%s1945_s4 + $0xc] sm:$0xff]   ;;  %v1952_v15 = vld [vmem:[%s1945_s4] sm:$0xff]   ;;  %vm400_vm1 = vcmask 1046528  }
  0x24   : > { %547 = vmatprep.subr.bf16.mxu0 %v1873_v12  ;;  %795 = vmatprep.subr.bf16.mxu1 %v1873_v12  ;;  %v1778_v14 = vld [vmem:[%s1945_s4 + $0x14] ss:$0 sps:$4 sm:$0x11]   ;;  %v624_v16 = vshrl.u32 %v1948_v13, 16  ;;  %v626_v17 = vshll.u32 %v1948_v13, 16  ;;  %v373_v20 = vshrl.u32 %v1952_v15, 16 }
  0x25   : > { %v631_v18 = vshll.u32 %v1778_v14, 16  ;;  %v1780_v19 = vld [vmem:[%s1945_s4 + $0x8] ss:$0 sps:$4 sm:$0x11]   ;;  %v375_v21 = vshll.u32 %v1952_v15, 16  ;;  %v651_v25 = vrot.slane %v1948_v13, 1 }
  0x26   : > { %v628_v22 = vrot.slane %v626_v17, 1  ;;  %v380_v24 = vshll.u32 %v1780_v19, 16  ;;  %v652_v27 = vrot.slane %v1778_v14, 1  ;;  %v1967_v28 = vld [vmem:[%s1945_s4 + $0x30] sm:$0xff]   ;;  %v1970_v29 = vld [vmem:[%s1945_s4 + $0x3c] sm:$0xff]   ;;  %v401_v34 = vrot.slane %v1952_v15, 1 }
  0x27   : > { %v633_v23 = vrot.slane %v631_v18, 1  ;;  %v377_v26 = vrot.slane %v375_v21, 1  ;;  %v1782_v32 = vld [vmem:[%s1945_s4 + $0x38] ss:$0 sps:$4 sm:$0x11]   ;;  %v402_v35 = vrot.slane %v1780_v19, 1 }
  0x28   : > { %v629_v30 = vor.u32 %v628_v22, %v624_v16  ;;  %v382_v31 = vrot.slane %v380_v24, 1  ;;  %v385_v37 = vshrl.u32 %v1967_v28, 16  ;;  %v387_v38 = vshll.u32 %v1967_v28, 16  ;;  %v1784_v40 = vld [vmem:[%s1945_s4 + $0x44] ss:$0 sps:$4 sm:$0x11]  }
  0x29   : > { %v378_v33 = vor.u32 %v377_v26, %v373_v20  ;;  %v392_v39 = vshll.u32 %v1782_v32, 16  ;;  %v404_v42 = vrot.slane %v1967_v28, 1  ;;  %v405_v43 = vrot.slane %v1782_v32, 1  ;;  %v1983_v45 = vld [vmem:[%s1945_s4 + $0x18] sm:$0xff]   ;;  %s2281_s30 = smov (!%p1961_p10, %s1537_s30), 7  ;;  %v1996_v53 = vld [vmem:[%s1945_s4 + $0x24] sm:$0xff]  }
  0x2a   : > { %v634_v36 = vsel %vm371_vm0, %v629_v30, %v633_v23  ;;  %v638_v44 = vshll.u32 %v1970_v29, 16  ;;  %v653_v46 = vsel %vm400_vm1, %v651_v25, %v652_v27  ;;  %v389_v47 = vrot.slane %v387_v38, 1  ;;  %v1786_v55 = vld [vmem:[%s1945_s4 + $0x20] ss:$0 sps:$4 sm:$0x11]   ;;  %v2010_v5 = vld [vmem:[%s1945_s4 + $0x48] sm:$0xff]   ;;  %s2213_s18 = scalar_lea.vmem %s2273_s2, %s2281_s30 }
  0x2b   : > { %647 = vrot.lane.b32.xlu1 %v634_v36, %s1874_s6  ;;  %v383_v41 = vsel %vm371_vm0, %v378_v33, %v382_v31  ;;  %v636_v48 = vshrl.u32 %v1970_v29, 16  ;;  %v403_v49 = vsel %vm400_vm1, %v401_v34, %v402_v35  ;;  %v394_v50 = vrot.slane %v392_v39, 1  ;;  %v1788_v0 = vld [vmem:[%s1945_s4 + $0x2c] ss:$0 sps:$4 sm:$0x11]   ;;  %s1749_s8 = smul.u32 108, %s2281_s30 }
  0x2c   : > { %396 = vrot.lane.b32.xlu0 %v383_v41, %s1874_s6  ;;  %v640_v51 = vrot.slane %v638_v44, 1  ;;  %v643_v52 = vshll.u32 %v1784_v40, 16  ;;  %v390_v54 = vor.u32 %v389_v47, %v385_v37  ;;  %v875_v56 = vshll.u32 %v1983_v45, 16  ;;  %v1790_v9 = vld [vmem:[%s1945_s4 + $0x50] ss:$0 sps:$4 sm:$0x11]  }
  0x2d   : > { %v406_v57 = vsel %vm400_vm1, %v404_v42, %v405_v43  ;;  %v654_v58 = vrot.slane %v1970_v29, 1  ;;  %v655_v59 = vrot.slane %v1784_v40, 1  ;;  %v873_v62 = vshrl.u32 %v1983_v45, 16  ;;  %s2023_s11 = scalar_lea.vmem %s2272_s1, %s1749_s8  ;;  %v2026_v16 = vld [vmem:[%s1945_s4 + $0x54] sm:$0xff]   ;;  %s1745_s12 = sshll.u32 (%p1927_p5), %s1912_s15, 6 }
  0x2e   : > { %v641_v60 = vor.u32 %v640_v51, %v636_v48  ;;  %v645_v61 = vrot.slane %v643_v52, 1  ;;  %v877_v63 = vrot.slane %v875_v56, 1  ;;  %v395_v1 = vsel %vm371_vm0, %v390_v54, %v394_v50  ;;  %v1791_v21 = vld [vmem:[%s2023_s11 + $0x38] sm:$0xff]   ;;  %v1792_v23 = vld [vmem:[%s2023_s11 + $0xa4] sm:$0xff]   ;;  %v1795_v36 = vld [vmem:[%s2023_s11 + $0x30] sm:$0xff]   ;;  %s1357_s25 = scalar_lea.vmem (%p1927_p5), %s2274_s3, %s1745_s12 }
  0x2f   : > { %657 = vrot.lane.b32.xlu1 %v653_v46, %s1875_s7  ;;  %v880_v2 = vshll.u32 %v1786_v55, 16  ;;  %v1124_v3 = vshll.u32 %v1996_v53, 16  ;;  %v900_v4 = vrot.slane %v1983_v45, 1  ;;  %v901_v6 = vrot.slane %v1786_v55, 1  ;;  %548 = vmatpush1.bf16.msra.mxu0 %v1791_v21  ;;  %v1796_v40 = vld [vmem:[%s2023_s11 + $0x9c] sm:$0xff]   ;;  %v1797_v43 = vld [vmem:[%s2023_s11 + $0x28] sm:$0xff]  }
  0x30   : > { %407 = vrot.lane.b32.xlu0 %v403_v49, %s1875_s7  ;;  %v1149_v7 = vrot.slane %v1996_v53, 1  ;;  %v1122_v8 = vshrl.u32 %v1996_v53, 16  ;;  %v656_v10 = vsel %vm400_vm1, %v654_v58, %v655_v59  ;;  %v646_v11 = vsel %vm371_vm0, %v641_v60, %v645_v61  ;;  %796 = vmatpush1.bf16.msra.mxu1 %v1792_v23  ;;  %v1794_v31 = vld [vmem:[%s1945_s4 + $0x5c] ss:$0 sps:$4 sm:$0x11]   ;;  %v1798_v48 = vld [vmem:[%s2023_s11 + $0x94] sm:$0xff]  }
  0x31   : > { %v1129_v14 = vshll.u32 %v1788_v0, 16  ;;  %v878_v17 = vor.u32 %v877_v63, %v873_v62  ;;  %v882_v18 = vrot.slane %v880_v2, 1  ;;  %v1126_v19 = vrot.slane %v1124_v3, 1  ;;  %549 = vmatprep.subr.bf16.mxu0 %v1873_v12  ;;  %797 = vmatprep.subr.bf16.mxu1 %v1873_v12  ;;  %v1799_v50 = vld [vmem:[%s2023_s11 + $0x20] sm:$0xff]   ;;  %v1800_v54 = vld [vmem:[%s2023_s11 + $0x8c] sm:$0xff]   ;;  %v1801_v58 = vld [vmem:[%s2023_s11 + $0x18] sm:$0xff]  }
  0x32   : > { %v887_v20 = vshll.u32 %v2010_v5, 16  ;;  %v892_v22 = vshll.u32 %v1790_v9, 16  ;;  %v1150_v24 = vrot.slane %v1788_v0, 1  ;;  %v903_v25 = vrot.slane %v2010_v5, 1  ;;  %v1802_v60 = vld [vmem:[%s2023_s11 + $0x84] sm:$0xff]   ;;  %v1803_v62 = vld [vmem:[%s2023_s11 + $0x10] sm:$0xff]  }
  0x33   : > { %409 = vrot.lane.b32.xlu1 %v406_v57, %s1875_s7  ;;  %v902_v26 = vsel %vm400_vm1, %v900_v4, %v901_v6  ;;  %v1131_v27 = vrot.slane %v1129_v14, 1  ;;  %v885_v30 = vshrl.u32 %v2010_v5, 16  ;;  %v1136_v32 = vshll.u32 %v2026_v16, 16  ;;  %550 = vmatpush1.bf16.msra.mxu0 %v1795_v36  ;;  %v1804_v63 = vld [vmem:[%s2023_s11 + $0x7c] sm:$0xff]   ;;  %v1805_v0 = vld [vmem:[%s2023_s11 + $0x8] sm:$0xff]  }
  0x34   : > { %398 = vrot.lane.b32.xlu0 %v395_v1, %s1874_s6  ;;  %v883_v33 = vsel %vm371_vm0, %v878_v17, %v882_v18  ;;  %v1127_v34 = vor.u32 %v1126_v19, %v1122_v8  ;;  %v889_v35 = vrot.slane %v887_v20, 1  ;;  %v904_v37 = vrot.slane %v1790_v9, 1  ;;  %798 = vmatpush1.bf16.msra.mxu1 %v1796_v40  ;;  %v1806_v1 = vld [vmem:[%s2023_s11 + $0x74] sm:$0xff]   ;;  %v1807_v2 = vld [vmem:[%s2023_s11] sm:$0xff]   ;;  %v1808_v3 = vld [vmem:[%s2023_s11 + $0x6c] sm:$0xff]  }
  0x35   : > { %v894_v38 = vrot.slane %v892_v22, 1  ;;  %v1134_v39 = vshrl.u32 %v2026_v16, 16  ;;  %v1151_v41 = vsel %vm400_vm1, %v1149_v7, %v1150_v24  ;;  %v1138_v42 = vrot.slane %v1136_v32, 1  ;;  %551 = vmatprep.subr.bf16.mxu0 %v1873_v12  ;;  %799 = vmatprep.subr.bf16.mxu1 %v1873_v12  ;;  %v1809_v4 = vld [vmem:[%s2023_s11 + $0x68] ss:$0 sps:$4 sm:$0xff]   ;;  %v1811_v9 = vld [vmem:[%s2023_s11 + $0x60] sm:$0xff]  }
  0x36   : > { %v1132_v44 = vsel %vm371_vm0, %v1127_v34, %v1131_v27  ;;  %v890_v46 = vor.u32 %v889_v35, %v885_v30  ;;  %v1141_v47 = vshll.u32 %v1794_v31, 16  ;;  %v1152_v49 = vrot.slane %v2026_v16, 1  ;;  %v1810_v6 = vld [vmem:[%s2023_s11 + $0xd4] ss:$0 sps:$4 sm:$0xff]   ;;  %v1814_v14 = vld [vmem:[%s2023_s11 + $0xc4] sm:$0xff]   ;;  %v1816_v18 = vld [vmem:[%s2023_s11 + $0xbc] sm:$0xff]  }
  0x37   : > { %659 = vrot.lane.b32.xlu1 %v656_v10, %s1875_s7  ;;  %552 = vmatpush1.bf16.msra.mxu0 %v1797_v43  ;;  %v905_v51 = vsel %vm400_vm1, %v903_v25, %v904_v37  ;;  %v1153_v52 = vrot.slane %v1794_v31, 1  ;;  %v1139_v56 = vor.u32 %v1138_v42, %v1134_v39  ;;  %vm543_vm2 = vcmask 1043456   ;;  %v1812_v10 = vld [vmem:[%s2023_s11 + $0xcc] sm:$0xff]   ;;  %v1837_v20 = vld [vmem:[%s2023_s11 + $0x140] ss:$0 sps:$4 sm:$0xff]   ;;  %v1818_v22 = vld [vmem:[%s2023_s11 + $0xb4] sm:$0xff]  }
  0x38   : > { %649 = vrot.lane.b32.xlu0 %v646_v11, %s1874_s6  ;;  %800 = vmatpush1.bf16.msra.mxu1 %v1798_v48  ;;  %v895_v55 = vsel %vm371_vm0, %v890_v46, %v894_v38  ;;  %v1143_v57 = vrot.slane %v1141_v47, 1  ;;  %v545_v7 = vsel %vm543_vm2, %v1809_v4, 0  ;;  %v793_v8 = vsel %vm543_vm2, %v1810_v6, 0  ;;  %v1813_v11 = vld [vmem:[%s2023_s11 + $0x58] sm:$0xff]   ;;  %v1815_v17 = vld [vmem:[%s2023_s11 + $0x50] sm:$0xff]   ;;  %v1817_v19 = vld [vmem:[%s2023_s11 + $0x48] sm:$0xff]  }
  0x39   : > { %553 = vmatprep.subr.bf16.mxu0 %v1873_v12  ;;  %801 = vmatprep.subr.bf16.mxu1 %v1873_v12  ;;  %v1154_v59 = vsel %vm400_vm1, %v1152_v49, %v1153_v52  ;;  %v1838_v21 = vld [vmem:[%s2023_s11 + $0x1ac] ss:$0 sps:$4 sm:$0xff]   ;;  %v2108_v23 = vsel %vm543_vm2, %v1837_v20, 0  ;;  %v1819_v25 = vld [vmem:[%s2023_s11 + $0x40] sm:$0xff]   ;;  %vm418_vm3 = vcmask 130048   ;;  %vm538_vm4 = vcmask 719872  }
  0x3a   : > { %v1144_v61 = vsel %vm371_vm0, %v1139_v56, %v1143_v57  ;;  %v2111_v24 = vsel %vm543_vm2, %v1838_v21, 0  ;;  %vm411_vm5 = vcmask 588800   ;;  %v1822_v32 = vld [vmem:[%s2023_s11 + $0x17c] sm:$0xff]   ;;  %v1821_v35 = vld [vmem:[%s2023_s11 + $0x110] sm:$0xff]  }
  0x3b   : > { %906 = vrot.lane.b32.xlu1 %v902_v26, %s1875_s7  ;;  %554 = vmatpush1.bf16.msra.mxu0 %v1799_v50  ;;  %v1820_v26 = vld [vmem:[%s2023_s11 + $0xac] sm:$0xff]   ;;  %v1824_v39 = vld [vmem:[%s2023_s11 + $0x174] sm:$0xff]   ;;  %v1828_v50 = vld [vmem:[%s2023_s11 + $0x164] sm:$0xff]  }
  0x3c   : > { %896 = vrot.lane.b32.xlu0 %v883_v33, %s1874_s6  ;;  %802 = vmatpush1.bf16.msra.mxu1 %v1800_v54  ;;  %v1829_v56 = vld [vmem:[%s2023_s11 + $0xf0] sm:$0xff]  }
  0x3d   : > { %555 = vmatprep.subr.bf16.mxu0 %v1873_v12  ;;  %803 = vmatprep.subr.bf16.mxu1 %v1873_v12  ;;  %v1841_v4 = vld [vmem:[%s2023_s11 + $0x130] sm:$0xff]  }
  0x3e   : > { %v1844_v6 = vld [vmem:[%s2023_s11 + $0x194] sm:$0xff]  }
  0x3f   : > { %1155 = vrot.lane.b32.xlu1 %v1151_v41, %s1875_s7  ;;  %556 = vmatpush1.bf16.msra.mxu0 %v1801_v58  ;;  %v1823_v41 = vld [vmem:[%s2023_s11 + $0x108] sm:$0xff]  }
  0x40   : > { %1145 = vrot.lane.b32.xlu0 %v1132_v44, %s1874_s6  ;;  %804 = vmatpush1.bf16.msra.mxu1 %v1802_v60  ;;  %v1825_v44 = vld [vmem:[%s2023_s11 + $0x100] sm:$0xff]   ;;  %v1831_v60 = vld [vmem:[%s2023_s11 + $0xe8] sm:$0xff]  }
  0x41   : > { %557 = vmatprep.subr.bf16.mxu0 %v1873_v12  ;;  %805 = vmatprep.subr.bf16.mxu1 %v1873_v12 }
  0x43   : > { %908 = vrot.lane.b32.xlu1 %v905_v51, %s1875_s7  ;;  %558 = vmatpush1.bf16.msra.mxu0 %v1803_v62  ;;  %v1833_v62 = vld [vmem:[%s2023_s11 + $0xe0] sm:$0xff]  }
  0x44   : > { %898 = vrot.lane.b32.xlu0 %v895_v55, %s1874_s6  ;;  %806 = vmatpush1.bf16.msra.mxu1 %v1804_v63  ;;  %v1836_v63 = vld [vmem:[%s2023_s11 + $0x144] sm:$0xff]  }
  0x45   : > { %559 = vmatprep.subr.bf16.mxu0 %v1873_v12  ;;  %807 = vmatprep.subr.bf16.mxu1 %v1873_v12 }
  0x47   : > { %1157 = vrot.lane.b32.xlu1 %v1154_v59, %s1875_s7  ;;  %560 = vmatpush1.bf16.msra.mxu0 %v1805_v0  ;;  %v1832_v59 = vld [vmem:[%s2023_s11 + $0x154] sm:$0xff]  }
  0x48   : > { %1147 = vrot.lane.b32.xlu0 %v1144_v61, %s1874_s6  ;;  %808 = vmatpush1.bf16.msra.mxu1 %v1806_v1  ;;  %v1834_v61 = vld [vmem:[%s2023_s11 + $0x14c] sm:$0xff]   ;;  %v1835_v0 = vld [vmem:[%s2023_s11 + $0xd8] sm:$0xff]   ;;  %v1840_v1 = vld [vmem:[%s2023_s11 + $0x1a4] sm:$0xff]  }
  0x49   : > { %561 = vmatprep.subr.bf16.mxu0 %v1873_v12  ;;  %809 = vmatprep.subr.bf16.mxu1 %v1873_v12 }
  0x4b   : > { %562 = vmatpush1.bf16.msra.mxu0 %v1807_v2  ;;  %v1839_v2 = vld [vmem:[%s2023_s11 + $0x138] sm:$0xff]  }
  0x4c   : > { %810 = vmatpush1.bf16.msra.mxu1 %v1808_v3  ;;  %567 = vmatprep.subr.bf16.mxu0 %v1873_v12  ;;  %v1842_v3 = vld [vmem:[%s2023_s11 + $0x19c] sm:$0xff]  }
  0x4d   : > { %815 = vmatprep.subr.bf16.mxu1 %v1873_v12 }
  0x4f   : > { %568 = vmatpush2.bf16.msra.mxu0 %v545_v7  ;;  %v1843_v7 = vld [vmem:[%s2023_s11 + $0x128] sm:$0xff]  }
  0x50   : > { %816 = vmatpush2.bf16.msra.mxu1 %v793_v8  ;;  %569 = vmatprep.subr.bf16.mxu0 %v1873_v12  ;;  %v1845_v8 = vld [vmem:[%s2023_s11 + $0x18c] sm:$0xff]  }
  0x51   : > { %817 = vmatprep.subr.bf16.mxu1 %v1873_v12 }
  0x53   : > { %570 = vmatpush2.bf16.msra.mxu0 %v1811_v9 }
  0x54   : > { %818 = vmatpush2.bf16.msra.mxu1 %v1812_v10  ;;  %571 = vmatprep.subr.bf16.mxu0 %v1873_v12 }
  0x55   : > { %819 = vmatprep.subr.bf16.mxu1 %v1873_v12 }
  0x57   : > { %572 = vmatpush2.bf16.msra.mxu0 %v1813_v11  ;;  %v1846_v11 = vld [vmem:[%s2023_s11 + $0x120] sm:$0xff]  }
  0x58   : > { %820 = vmatpush2.bf16.msra.mxu1 %v1814_v14  ;;  %573 = vmatprep.subr.bf16.mxu0 %v1873_v12  ;;  %v1847_v14 = vld [vmem:[%s2023_s11 + $0x184] sm:$0xff]  }
  0x59   : > { %821 = vmatprep.subr.bf16.mxu1 %v1873_v12 }
  0x5b   : > { %574 = vmatpush2.bf16.msra.mxu0 %v1815_v17  ;;  %v1848_v17 = vld [vmem:[%s2023_s11 + $0x118] sm:$0xff]  }
  0x5c   : > { %822 = vmatpush2.bf16.msra.mxu1 %v1816_v18  ;;  %575 = vmatprep.subr.bf16.mxu0 %v1873_v12 }
  0x5d   : > { %823 = vmatprep.subr.bf16.mxu1 %v1873_v12 }
  0x5f   : > { %576 = vmatpush2.bf16.msra.mxu0 %v1817_v19 }
  0x60   : > { %824 = vmatpush2.bf16.msra.mxu1 %v1818_v22  ;;  %577 = vmatprep.subr.bf16.mxu0 %v1873_v12 }
  0x61   : > { %825 = vmatprep.subr.bf16.mxu1 %v1873_v12 }
  0x63   : > { %578 = vmatpush2.bf16.msra.mxu0 %v1819_v25 }
  0x64   : > { %826 = vmatpush2.bf16.msra.mxu1 %v1820_v26  ;;  %1044 = vmatprep.subr.bf16.mxu0 %v1873_v12 }
  0x65   : > { %1293 = vmatprep.subr.bf16.mxu1 %v1873_v12 }
  0x9d   : > { %v648_v27 = vpop.permute.xlu1 %647 }
  0x9e   : > { %v397_v30 = vpop.permute.xlu0 %396  ;;  %v662_v37 = vsel %vm411_vm5, %v1948_v13, %v648_v27 }
  0x9f   : > { %v413_v38 = vsel %vm411_vm5, %v1952_v15, %v397_v30  ;;  %v1826_v15 = vld [vmem:[%s2023_s11 + $0x16c] sm:$0xff]  }
  0xa1   : > { %v658_v31 = vpop.permute.xlu1 %657 }
  0xa2   : > { %v408_v33 = vpop.permute.xlu0 %407  ;;  %v668_v34 = vsel %vm418_vm3, %v648_v27, %v658_v31 }
  0xa3   : > { %v420_v36 = vsel %vm418_vm3, %v397_v30, %v408_v33  ;;  %1614 = vmatprep.mubr.msk.bf16.mxu1 %vm538_vm4, %v668_v34 }
  0xa4   : > { %1559 = vmatprep.mubr.msk.bf16.mxu0 %vm538_vm4, %v420_v36  ;;  %828 = vmatmul.mubr.bf16.vlgmr.msra.gmra.mxu1 %v662_v37 }
  0xa5   : > { %580 = vmatmul.mubr.bf16.vlgmr.msra.gmra.mxu0 %v413_v38  ;;  %1294 = vmatpush1.bf16.msra.mxu1 %v1822_v32  ;;  %v410_v40 = vpop.permute.xlu1 %409 }
  0xa6   : > { %1045 = vmatpush1.bf16.msra.mxu0 %v1821_v35  ;;  %1295 = vmatprep.subr.bf16.mxu1 %v1873_v12  ;;  %v399_v42 = vpop.permute.xlu0 %398 }
  0xa7   : > { %1046 = vmatprep.subr.bf16.mxu0 %v1873_v12  ;;  %v422_v13 = vsel %vm418_vm3, %v399_v42, %v410_v40  ;;  %v416_v46 = vsel %vm411_vm5, %v1967_v28, %v399_v42  ;;  %v1827_v28 = vld [vmem:[%s2023_s11 + $0xf8] sm:$0xff]  }
  0xa8   : > { %1560 = vmatprep.mubr.msk.bf16.mxu0 %vm538_vm4, %v422_v13 }
  0xa9   : > { %1296 = vmatpush1.bf16.msra.mxu1 %v1824_v39  ;;  %v660_v43 = vpop.permute.xlu1 %659 }
  0xaa   : > { %1047 = vmatpush1.bf16.msra.mxu0 %v1823_v41  ;;  %1297 = vmatprep.subr.bf16.mxu1 %v1873_v12  ;;  %v650_v47 = vpop.permute.xlu0 %649 }
  0xab   : > { %1048 = vmatprep.subr.bf16.mxu0 %v1873_v12  ;;  %v670_v48 = vsel %vm418_vm3, %v650_v47, %v660_v43  ;;  %v665_v49 = vsel %vm411_vm5, %v1970_v29, %v650_v47  ;;  %v1830_v29 = vld [vmem:[%s2023_s11 + $0x15c] sm:$0xff]  }
  0xac   : > { %1615 = vmatprep.mubr.msk.bf16.mxu1 %vm538_vm4, %v670_v48  ;;  %v1717_v48 = vld [vmem:[%s2213_s18 + $0x3] ss:$0 sm:$0xff] }
  0xad   : > { %1298 = vmatpush1.bf16.msra.mxu1 %v1826_v15  ;;  %588 = vmatmul.mubr.bf16.gmra.mxu0 %v416_v46  ;;  %v907_v51 = vpop.permute.xlu1 %906 }
  0xae   : > { %1049 = vmatpush1.bf16.msra.mxu0 %v1825_v44  ;;  %1299 = vmatprep.subr.bf16.mxu1 %v1873_v12  ;;  %v2148_v52 = vpop.permute.xlu0 %896 }
  0xaf   : > { %1050 = vmatprep.subr.bf16.mxu0 %v1873_v12  ;;  %836 = vmatmul.mubr.bf16.gmra.mxu1 %v665_v49  ;;  %v917_v54 = vsel %vm418_vm3, %v2148_v52, %v907_v51  ;;  %v1658_v49 = vld [vmem:[%s2213_s18 + $0x2] ss:$0 sm:$0xff] }
  0xb0   : > { %1673 = vmatprep.mubr.msk.bf16.mxu0 %vm538_vm4, %v917_v54 }
  0xb1   : > { %1300 = vmatpush1.bf16.msra.mxu1 %v1828_v50  ;;  %v1156_v55 = vpop.permute.xlu1 %1155 }
  0xb2   : > { %1051 = vmatpush1.bf16.msra.mxu0 %v1827_v28  ;;  %1301 = vmatprep.subr.bf16.mxu1 %v1873_v12  ;;  %v1146_v57 = vpop.permute.xlu0 %1145 }
  0xb3   : > { %1052 = vmatprep.subr.bf16.mxu0 %v1873_v12  ;;  %v1166_v58 = vsel %vm418_vm3, %v1146_v57, %v1156_v55  ;;  %v1160_v20 = vsel %vm411_vm5, %v1996_v53, %v1146_v57 }
  0xb4   : > { %1732 = vmatprep.mubr.msk.bf16.mxu1 %vm538_vm4, %v1166_v58 }
  0xb5   : > { %1302 = vmatpush1.bf16.msra.mxu1 %v1830_v29  ;;  %v909_v9 = vpop.permute.xlu1 %908 }
  0xb6   : > { %1053 = vmatpush1.bf16.msra.mxu0 %v1829_v56  ;;  %1303 = vmatprep.subr.bf16.mxu1 %v1873_v12  ;;  %v899_v10 = vpop.permute.xlu0 %898 }
  0xb7   : > { %1054 = vmatprep.subr.bf16.mxu0 %v1873_v12  ;;  %v919_v22 = vsel %vm418_vm3, %v899_v10, %v909_v9  ;;  %v914_v53 = vsel %vm411_vm5, %v2010_v5, %v899_v10 }
  0xb9   : > { %1304 = vmatpush1.bf16.msra.mxu1 %v1832_v59  ;;  %v1158_v18 = vpop.permute.xlu1 %1157 }
  0xba   : > { %1055 = vmatpush1.bf16.msra.mxu0 %v1831_v60  ;;  %1305 = vmatprep.subr.bf16.mxu1 %v1873_v12  ;;  %v1148_v19 = vpop.permute.xlu0 %1147 }
  0xbb   : > { %1056 = vmatprep.subr.bf16.mxu0 %v1873_v12  ;;  %v1168_v21 = vsel %vm418_vm3, %v1148_v19, %v1158_v18 }
  0xbd   : > { %1306 = vmatpush1.bf16.msra.mxu1 %v1834_v61 }
  0xbe   : > { %1057 = vmatpush1.bf16.msra.mxu0 %v1833_v62  ;;  %1307 = vmatprep.subr.bf16.mxu1 %v1873_v12 }
  0xbf   : > { %1058 = vmatprep.subr.bf16.mxu0 %v1873_v12 }
  0xc1   : > { %1308 = vmatpush1.bf16.msra.mxu1 %v1836_v63 }
  0xc2   : > { %1059 = vmatpush1.bf16.msra.mxu0 %v1835_v0  ;;  %1313 = vmatprep.subr.bf16.mxu1 %v1873_v12 }
  0xc3   : > { %1064 = vmatprep.subr.bf16.mxu0 %v1873_v12 }
  0xc5   : > { %1314 = vmatpush2.bf16.msra.mxu1 %v2111_v24  ;;  %v1544_v24 = vld [vmem:[%s2213_s18] ss:$0 sm:$0xff] }
  0xc6   : > { %1065 = vmatpush2.bf16.msra.mxu0 %v2108_v23  ;;  %1315 = vmatprep.subr.bf16.mxu1 %v1873_v12  ;;  %v911_v23 = vsel %vm411_vm5, %v1983_v45, %v2148_v52  ;;  %v1599_v45 = vld [vmem:[%s2213_s18 + $0x1] ss:$0 sm:$0xff] }
  0xc7   : > { %1066 = vmatprep.subr.bf16.mxu0 %v1873_v12 }
  0xc9   : > { %1316 = vmatpush2.bf16.msra.mxu1 %v1840_v1 }
  0xca   : > { %1067 = vmatpush2.bf16.msra.mxu0 %v1839_v2  ;;  %1317 = vmatprep.subr.bf16.mxu1 %v1873_v12 }
  0xcb   : > { %1068 = vmatprep.subr.bf16.mxu0 %v1873_v12 }
  0xcd   : > { %1318 = vmatpush2.bf16.msra.mxu1 %v1842_v3 }
  0xce   : > { %1069 = vmatpush2.bf16.msra.mxu0 %v1841_v4  ;;  %1319 = vmatprep.subr.bf16.mxu1 %v1873_v12 }
  0xcf   : > { %1070 = vmatprep.subr.bf16.mxu0 %v1873_v12 }
  0xd1   : > { %1320 = vmatpush2.bf16.msra.mxu1 %v1844_v6 }
  0xd2   : > { %1071 = vmatpush2.bf16.msra.mxu0 %v1843_v7  ;;  %1321 = vmatprep.subr.bf16.mxu1 %v1873_v12 }
  0xd3   : > { %1072 = vmatprep.subr.bf16.mxu0 %v1873_v12 }
  0xd5   : > { %1322 = vmatpush2.bf16.msra.mxu1 %v1845_v8 }
  0xd6   : > { %1073 = vmatpush2.bf16.msra.mxu0 %v1846_v11  ;;  %1323 = vmatprep.subr.bf16.mxu1 %v1873_v12 }
  0xd7   : > { %1074 = vmatprep.subr.bf16.mxu0 %v1873_v12  ;;  %v1163_v12 = vsel %vm411_vm5, %v2026_v16, %v1148_v19 }
  0xd9   : > { %1324 = vmatpush2.bf16.msra.mxu1 %v1847_v14 }
  0xda   : > { %1075 = vmatpush2.bf16.msra.mxu0 %v1848_v17 }
  0xdc   : > { %1326 = vmatmul.mubr.bf16.vlgmr.msra.gmra.mxu1 %v1160_v20 }
  0xdd   : > { %1077 = vmatmul.mubr.bf16.vlgmr.msra.gmra.mxu0 %v911_v23  ;;  %1733 = vmatprep.mubr.msk.bf16.mxu1 %vm538_vm4, %v1168_v21 }
  0xde   : > { %1674 = vmatprep.mubr.msk.bf16.mxu0 %vm538_vm4, %v919_v22 }
  0xe4   : > { %1334 = vmatmul.mubr.bf16.gmra.mxu1 %v1163_v12 }
  0xe5   : > { %1085 = vmatmul.mubr.bf16.gmra.mxu0 %v914_v53 }
 0x164   : > { %v829_v25 = vpop.f32.mrf.mxu1 }
 0x165   : > { %v581_v26 = vpop.f32.mrf.mxu0  ;;  %v830_v27 = vadd.f32 %v1599_v45, %v829_v25 }
 0x166   : > { %v582_v16 = vadd.f32 %v1544_v24, %v581_v26  ;;  %v831_v30 = vpop.f32.mrf.mxu1 }
 0x167   : > { %1616 = vst [vmem:[%s2219_s22 + $0x10] sm:$0xff] %v830_v27  ;;  %v583_v5 = vpop.f32.mrf.mxu0 }
 0x168   : > { %596 = vst [vmem:[%s2219_s22] sm:$0xff] %v582_v16  ;;  %v832_v31 = vpop.f32.mrf.mxu1 }
 0x169   : > { %v584_v32 = vpop.f32.mrf.mxu0  ;;  %v833_v33 = vadd.f32 %v1599_v45, %v832_v31 }
 0x16a   : > { %v585_v34 = vadd.f32 %v1544_v24, %v584_v32  ;;  %v834_v35 = vpop.f32.mrf.mxu1 }
 0x16b   : > { %1617 = vst [vmem:[%s2219_s22 + $0x18] sm:$0xff] %v833_v33  ;;  %v586_v36 = vpop.f32.mrf.mxu0 }
 0x16c   : > { %597 = vst [vmem:[%s2219_s22 + $0x8] sm:$0xff] %v585_v34 }
 0x16d   : > { %v589_v37 = vpop.f32.mrf.mxu0 }
 0x16e   : > { %v590_v38 = vadd.f32 %v1544_v24, %v589_v37  ;;  %v1420_v14 = vld [vmem:[%s2219_s22 + $0x10] sm:$0xff] (%p1927_p5) }
 0x16f   : > { %v591_v39 = vpop.f32.mrf.mxu0  ;;  %v837_v40 = vpop.f32.mrf.mxu1  ;;  %v1416_v10 = vld [vmem:[%s2219_s22] sm:$0xff] (%p1927_p5)  ;;  %1421 = vst [vmem:[%s1357_s25 + $0x10] sm:$0xff] (%p1927_p5), %v1420_v14 }
 0x170   : > { %598 = vst [vmem:[%s2219_s22 + $0x40] sm:$0xff] %v590_v38  ;;  %v838_v41 = vadd.f32 %v1599_v45, %v837_v40  ;;  %1417 = vst [vmem:[%s1357_s25] sm:$0xff] (%p1927_p5), %v1416_v10 }
 0x171   : > { %v592_v42 = vpop.f32.mrf.mxu0  ;;  %v839_v13 = vpop.f32.mrf.mxu1 }
 0x172   : > { %v593_v15 = vadd.f32 %v1544_v24, %v592_v42  ;;  %1618 = vst [vmem:[%s2219_s22 + $0x50] sm:$0xff] %v838_v41  ;;  %v1422_v17 = vld [vmem:[%s2219_s22 + $0x18] sm:$0xff] (%p1927_p5) }
 0x173   : > { %v594_v43 = vpop.f32.mrf.mxu0  ;;  %v840_v44 = vpop.f32.mrf.mxu1  ;;  %v1418_v11 = vld [vmem:[%s2219_s22 + $0x8] sm:$0xff] (%p1927_p5)  ;;  %1423 = vst [vmem:[%s1357_s25 + $0x18] sm:$0xff] (%p1927_p5), %v1422_v17 }
 0x174   : > { %599 = vst [vmem:[%s2219_s22 + $0x48] sm:$0xff] %v593_v15  ;;  %v841_v46 = vadd.f32 %v1599_v45, %v840_v44  ;;  %1419 = vst [vmem:[%s1357_s25 + $0x8] sm:$0xff] (%p1927_p5), %v1418_v11 }
 0x175   : > { %v842_v47 = vpop.f32.mrf.mxu1 }
 0x176   : > { %1619 = vst [vmem:[%s2219_s22 + $0x58] sm:$0xff] %v841_v46 }
 0x177   : > { %v1432_v22 = vld [vmem:[%s2219_s22 + $0x40] sm:$0xff] (%p1927_p5) }
 0x178   : > { %1433 = vst [vmem:[%s1357_s25 + $0x80] sm:$0xff] (%p1927_p5), %v1432_v22 }
 0x179   : > { %v1436_v12 = vld [vmem:[%s2219_s22 + $0x50] sm:$0xff] (%p1927_p5) }
 0x17a   : > { %1437 = vst [vmem:[%s1357_s25 + $0x90] sm:$0xff] (%p1927_p5), %v1436_v12 }
 0x17b   : > { %v1434_v23 = vld [vmem:[%s2219_s22 + $0x48] sm:$0xff] (%p1927_p5) }
 0x17c   : > { %1435 = vst [vmem:[%s1357_s25 + $0x88] sm:$0xff] (%p1927_p5), %v1434_v23 }
 0x17d   : > { %v1438_v53 = vld [vmem:[%s2219_s22 + $0x58] sm:$0xff] (%p1927_p5) }
 0x17e   : > { %1439 = vst [vmem:[%s1357_s25 + $0x98] sm:$0xff] (%p1927_p5), %v1438_v53 }
 0x19c   : > { %v1327_v50 = vpop.f32.mrf.mxu1 }
 0x19d   : > { %v1078_v51 = vpop.f32.mrf.mxu0  ;;  %v1328_v28 = vadd.f32 %v1717_v48, %v1327_v50 }
 0x19e   : > { %v1079_v52 = vadd.f32 %v1658_v49, %v1078_v51  ;;  %v1329_v54 = vpop.f32.mrf.mxu1 }
 0x19f   : > { %1734 = vst [vmem:[%s2219_s22 + $0x30] sm:$0xff] %v1328_v28  ;;  %v1080_v29 = vpop.f32.mrf.mxu0 }
 0x1a0   : > { %1675 = vst [vmem:[%s2219_s22 + $0x20] sm:$0xff] %v1079_v52  ;;  %v1330_v55 = vpop.f32.mrf.mxu1 }
 0x1a1   : > { %v1081_v56 = vpop.f32.mrf.mxu0  ;;  %v1331_v57 = vadd.f32 %v1717_v48, %v1330_v55 }
 0x1a2   : > { %v1082_v58 = vadd.f32 %v1658_v49, %v1081_v56  ;;  %v1332_v59 = vpop.f32.mrf.mxu1 }
 0x1a3   : > { %1735 = vst [vmem:[%s2219_s22 + $0x38] sm:$0xff] %v1331_v57  ;;  %v1083_v60 = vpop.f32.mrf.mxu0 }
 0x1a4   : > { %1676 = vst [vmem:[%s2219_s22 + $0x28] sm:$0xff] %v1082_v58  ;;  %v1335_v61 = vpop.f32.mrf.mxu1 }
 0x1a5   : > { %v1086_v62 = vpop.f32.mrf.mxu0  ;;  %v1336_v63 = vadd.f32 %v1717_v48, %v1335_v61 }
 0x1a6   : > { %v1087_v0 = vadd.f32 %v1658_v49, %v1086_v62  ;;  %v1337_v1 = vpop.f32.mrf.mxu1  ;;  %v1428_v20 = vld [vmem:[%s2219_s22 + $0x30] sm:$0xff] (%p1927_p5) }
 0x1a7   : > { %1736 = vst [vmem:[%s2219_s22 + $0x70] sm:$0xff] %v1336_v63  ;;  %v1088_v2 = vpop.f32.mrf.mxu0  ;;  %v1424_v18 = vld [vmem:[%s2219_s22 + $0x20] sm:$0xff] (%p1927_p5)  ;;  %1429 = vst [vmem:[%s1357_s25 + $0x30] sm:$0xff] (%p1927_p5), %v1428_v20 }
 0x1a8   : > { %1677 = vst [vmem:[%s2219_s22 + $0x60] sm:$0xff] %v1087_v0  ;;  %v1338_v3 = vpop.f32.mrf.mxu1  ;;  %1353 = sbr.rel (!%p1927_p5) target bundleno = 437 (0x1b5), region = 77  ;;  %1425 = vst [vmem:[%s1357_s25 + $0x20] sm:$0xff] (%p1927_p5), %v1424_v18 }
 0x1a9   : > { %v1089_v4 = vpop.f32.mrf.mxu0  ;;  %v1339_v6 = vadd.f32 %v1717_v48, %v1338_v3 }
 0x1aa   : > { %v1090_v7 = vadd.f32 %v1658_v49, %v1089_v4  ;;  %v1340_v8 = vpop.f32.mrf.mxu1  ;;  %v1430_v21 = vld [vmem:[%s2219_s22 + $0x38] sm:$0xff] (%p1927_p5) }
 0x1ab   : > { %1737 = vst [vmem:[%s2219_s22 + $0x78] sm:$0xff] %v1339_v6  ;;  %v1091_v9 = vpop.f32.mrf.mxu0  ;;  %v1426_v19 = vld [vmem:[%s2219_s22 + $0x28] sm:$0xff] (%p1927_p5)  ;;  %1431 = vst [vmem:[%s1357_s25 + $0x38] sm:$0xff] (%p1927_p5), %v1430_v21 }
 0x1ac   : > { %1678 = vst [vmem:[%s2219_s22 + $0x68] sm:$0xff] %v1090_v7  ;;  %1427 = vst [vmem:[%s1357_s25 + $0x28] sm:$0xff] (%p1927_p5), %v1426_v19 }
 0x1ae   : > { %v1444_v25 = vld [vmem:[%s2219_s22 + $0x70] sm:$0xff] }
 0x1af   : > { %v1440_v45 = vld [vmem:[%s2219_s22 + $0x60] sm:$0xff]  ;;  %1445 = vst [vmem:[%s1357_s25 + $0xb0] sm:$0xff] %v1444_v25 }
 0x1b0   : > { %1441 = vst [vmem:[%s1357_s25 + $0xa0] sm:$0xff] %v1440_v45 }
 0x1b2   : > { %v1446_v26 = vld [vmem:[%s2219_s22 + $0x78] sm:$0xff] }
 0x1b3   : > { %v1442_v24 = vld [vmem:[%s2219_s22 + $0x68] sm:$0xff]  ;;  %1447 = vst [vmem:[%s1357_s25 + $0xb8] sm:$0xff] %v1446_v26 }
 0x1b4   : > { %1443 = vst [vmem:[%s1357_s25 + $0xa8] sm:$0xff] %v1442_v24 }
 0x1b5 PF: > { %p10_p11 = scmp.ge.s32.totalorder %s1915_s16, 4   ;;  %s2277_s12 = smov %s1867_s13 }
 0x1b6   : > { %s2278_s13 = smov %s1925_s19  ;;  %s2279_s14 = smov %s1915_s16 }
 0x1b7   :  { %12 = sbr.rel (!%p10_p11) target bundleno = 2 (0x2), region = 164 }

</bundles_post_ra>
